<compile_context>
chip_gen: v7x
topology: tpu7x:2x2x1
jax: 0.10.0
libtpu: 0.0.40
codegen_flags: <defaults>
</compile_context>

<pallas_src>
import functools

import jax
import jax.numpy as jnp
from jax import lax
from jax.experimental import pallas as pl
from jax.experimental.pallas import tpu as pltpu

EPS = 1e-12  # PyTorch F.normalize default eps (clamp is applied to the norm)


def _cdiv(a, b):
    return -(-a // b)


def _round_up(a, m):
    return _cdiv(a, m) * m


def _netvlad_kernel(x_ref, w_ref, cent_ref, out_ref, agg_ref, asum_ref,
                    *, tile_n, n_valid, needs_mask):
    # x_ref:    (1, C, TN)  feature tile (C on sublanes, pixels on lanes)
    # w_ref:    (K, C)      soft-assign 1x1 conv weight (pre-cast to MXU dtype)
    # cent_ref: (K, C)      cluster centroids
    # out_ref:  (1, K, C)   normalized VLAD descriptor for this batch element
    # agg_ref:  (K, C) f32  scratch accumulator: sum_n a[k,n] * x_n[c,n]
    # asum_ref: (K, 1) f32  scratch accumulator: sum_n a[k,n]
    n_idx = pl.program_id(1)

    @pl.when(n_idx == 0)
    def _init():
        agg_ref[...] = jnp.zeros_like(agg_ref)
        asum_ref[...] = jnp.zeros_like(asum_ref)

    mx_dtype = w_ref.dtype  # bf16-native MXU path (W pre-cast in the wrapper)

    xf = x_ref[0].astype(jnp.float32)                            # (C, TN)

    # --- L2 normalize over channels (F.normalize(x, p=2, dim=1)) ---
    # rsqrt(max(sumsq, EPS^2)) == 1 / max(norm, EPS); rsqrt runs on the EUP.
    inv_norm = lax.rsqrt(
        jnp.maximum(jnp.sum(xf * xf, axis=0, keepdims=True), EPS * EPS))  # (1, TN)
    x_n = xf * inv_norm                                          # (C, TN) f32
    x_n_mx = x_n.astype(mx_dtype)

    # --- soft assignment: logits[k, n] = sum_c W[k, c] * x_n[c, n] -> (K, TN) ---
    logits = lax.dot_general(
        w_ref[...], x_n_mx,
        dimension_numbers=(((1,), (0,)), ((), ())),
        preferred_element_type=jnp.float32)                      # (K, TN)

    # --- softmax over clusters (sublane axis); reciprocal goes to the EUP ---
    m = jnp.max(logits, axis=0, keepdims=True)
    e = jnp.exp(logits - m)
    a = e * pl.reciprocal(jnp.sum(e, axis=0, keepdims=True), approx=True)  # (K, TN)

    if needs_mask:
        # Padded x columns are zero, so they contribute nothing to agg, but the
        # softmax gives them weight 1/K: mask `a` to zero on padded lanes so
        # asum (and hence -asum*centroids) stays correct.
        col = lax.broadcasted_iota(jnp.int32, (1, tile_n), 1) + n_idx * tile_n
        a = jnp.where(col < n_valid, a, 0.0)

    # --- accumulate: agg[k,c] += sum_n a[k,n]*x_n[c,n];  asum[k] += sum_n a[k,n]
    # Lane-contracted a @ x_n^T is the same MXU pattern as flash-attention's
    # q @ k^T; if a profile ever shows a materialized vxpose of x_n here, swap
    # operands to accumulate a (C, K) scratch instead (transposed once/batch).
    agg_ref[...] += lax.dot_general(
        a.astype(mx_dtype), x_n_mx,
        dimension_numbers=(((1,), (1,)), ((), ())),              # contract N (lanes)
        preferred_element_type=jnp.float32)                      # (K, C)
    asum_ref[...] += jnp.sum(a, axis=1, keepdims=True)           # (K, 1)

    @pl.when(n_idx == pl.num_programs(1) - 1)
    def _finalize():
        # vlad[k, c] = sum_n a[k, n] * (x_n[c, n] - centroids[k, c])
        vlad = agg_ref[...] - asum_ref[...] * cent_ref[...].astype(jnp.float32)

        # intra-normalization over C (F.normalize(vlad, dim=2))
        inv_c = lax.rsqrt(
            jnp.maximum(jnp.sum(vlad * vlad, axis=-1, keepdims=True), EPS * EPS))
        vlad = vlad * inv_c

        # global normalization over the flattened K*C (F.normalize(vlad, dim=1))
        inv_g = lax.rsqrt(jnp.maximum(jnp.sum(vlad * vlad), EPS * EPS))
        vlad = vlad * inv_g

        out_ref[0] = vlad.astype(out_ref.dtype)


def _tpu_vmem_capacity_bytes():
    """Per-core VMEM capacity; falls back to device_kind heuristics."""
    try:
        return int(pltpu.get_tpu_info().vmem_capacity_bytes)
    except Exception:
        try:
            kind = jax.devices()[0].device_kind.lower()
        except Exception:
            kind = ""
        return (64 << 20) if "v7" in kind else (128 << 20)


def _is_v5e():
    try:
        kind = jax.devices()[0].device_kind.lower()
    except Exception:
        return False
    return ("v5e" in kind) or ("v5 lite" in kind) or ("v5litepod" in kind)


def _pick_tile_n(n, c, itemsize, vmem_cap_bytes):
    """Pick a lane-aligned (multiple of 128) N tile.  Per-buffer target scales
    with the chip's VMEM (~1/16, clamped to [2 MiB, 8 MiB]) so 2-3 pipelined x
    buffers fit comfortably on v5e/v6e (128 MiB) and v7x (64 MiB).  Returns
    (tile_n, n_tiles); tile_n * n_tiles >= n (wrapper zero-pads the remainder)."""
    target = min(8 << 20, max(2 << 20, vmem_cap_bytes // 16))
    cap = max(128, (target // max(1, c * itemsize)) // 128 * 128)
    n128 = _round_up(n, 128)
    if n128 <= cap:
        return n128, 1
    n_tiles = _cdiv(n128, cap)
    tn = _round_up(_cdiv(n, n_tiles), 128)   # minimizes padding waste (< 128/tile)
    return tn, n_tiles


def netvlad_forward(x_nchw, soft_assign_weight, centroids, *,
                    mxu_dtype=jnp.bfloat16):
    """x_nchw: (B, C, H, W); soft_assign_weight: (K, C); centroids: (K, C).
    Returns (B, K*C) NetVLAD descriptors (same semantics as NetVLADLayer.forward)."""
    B, C, H, W = x_nchw.shape
    K = centroids.shape[0]
    N = H * W

    itemsize = jnp.dtype(x_nchw.dtype).itemsize
    vmem_cap = _tpu_vmem_capacity_bytes()
    tn, n_tiles = _pick_tile_n(N, C, itemsize, vmem_cap)
    n_padded = tn * n_tiles
    needs_mask = n_padded != N

    # MXU is bf16-native on v5e/v6e/v7x: keep matmul operands narrow (f32 acc);
    # if the input is already <=16-bit, use it as-is.
    mx_dtype = x_nchw.dtype if itemsize <= 2 else mxu_dtype

    # Free reshape (contiguous): NCHW -> (B, C, N).  No transpose.
    x_bcn = x_nchw.reshape(B, C, N)
    if needs_mask:
        # One extra HBM pass only when N isn't already tile-aligned.
        x_bcn = jnp.pad(x_bcn, ((0, 0), (0, 0), (0, n_padded - N)))

    # Hoist the per-tile cast of W out of the grid loop (pure VPU filler there).
    w_mx = soft_assign_weight.astype(mx_dtype)

    kernel = functools.partial(
        _netvlad_kernel, tile_n=tn, n_valid=N, needs_mask=needs_mask)

    # Deeper input pipelining on v5e (most HBM/DMA-bound of the three gens).
    x_spec_kwargs = {}
    if _is_v5e():
        try:
            probe = dict(pipeline_mode=pl.Buffered(3))
            pl.BlockSpec((1, C, tn), lambda b, n: (b, 0, n), **probe)
            x_spec_kwargs = probe
        except TypeError:
            x_spec_kwargs = {}
    n_bufs = 3 if x_spec_kwargs else 2

    # VMEM budget: pipelined x buffers + double-buffered small operands/output
    # + f32 accumulators + headroom, clamped under the per-core capacity.
    x_block_bytes = C * tn * itemsize
    small_bytes = 2 * K * C * (jnp.dtype(mx_dtype).itemsize + 2 * itemsize)
    scratch_bytes = 4 * (K * C + K)
    vmem_limit = int(min(0.85 * vmem_cap,
                         n_bufs * x_block_bytes + small_bytes + scratch_bytes
                         + (4 << 20)))
    vmem_limit = max(vmem_limit, 16 << 20)

    # TODO(synk): on v7x with B == 1 (or odd), add a second "parallel" split of
    # N with per-half partial accumulators + a tiny combine pass so both
    # TensorCores are used; here batch is the only parallel axis.
    out = pl.pallas_call(
        kernel,
        out_shape=jax.ShapeDtypeStruct((B, K, C), x_nchw.dtype),
        grid_spec=pltpu.PrefetchScalarGridSpec(
            num_scalar_prefetch=0,
            grid=(B, n_tiles),                     # reduction (N) axis last
            in_specs=[
                pl.BlockSpec((1, C, tn), lambda b, n: (b, 0, n), **x_spec_kwargs),
                pl.BlockSpec((K, C), lambda b, n: (0, 0)),
                pl.BlockSpec((K, C), lambda b, n: (0, 0)),
            ],
            out_specs=pl.BlockSpec((1, K, C), lambda b, n: (b, 0, 0)),
            scratch_shapes=[
                pltpu.VMEM((K, C), jnp.float32),   # agg accumulator
                pltpu.VMEM((K, 1), jnp.float32),   # sum of soft-assign weights
            ],
        ),
        compiler_params=pltpu.CompilerParams(
            dimension_semantics=("parallel", "arbitrary"),
            vmem_limit_bytes=vmem_limit),
    )(x_bcn, w_mx, centroids)

    # Free reshape: (B, K, C) -> (B, K*C).
    return out.reshape(B, K * C)


def _netvlad_ref(x_nchw, w, cent):
    """Pure-JAX f32 reference mirroring NetVLADLayer.forward."""
    B, C, H, W = x_nchw.shape
    K = cent.shape[0]
    x = x_nchw.reshape(B, C, H * W).astype(jnp.float32)
    x = x / jnp.maximum(jnp.linalg.norm(x, axis=1, keepdims=True), EPS)
    logits = jnp.einsum('kc,bcn->bkn', w.astype(jnp.float32), x)
    a = jax.nn.softmax(logits, axis=1)
    agg = jnp.einsum('bkn,bcn->bkc', a, x)
    asum = jnp.sum(a, axis=2)                                       # (B, K)
    vlad = agg - asum[..., None] * cent.astype(jnp.float32)[None]
    vlad = vlad / jnp.maximum(jnp.linalg.norm(vlad, axis=2, keepdims=True), EPS)
    vlad = vlad.reshape(B, K * C)
    vlad = vlad / jnp.maximum(jnp.linalg.norm(vlad, axis=1, keepdims=True), EPS)
    return vlad


if __name__ == "__main__":
    # Small shapes consistent with the module's forward pass.
    B, C, H, W = 2, 32, 8, 8        # encoder_dim = 32
    K = 8                           # num_clusters = 8

    key = jax.random.PRNGKey(0)
    k_x, k_c, k_w = jax.random.split(key, 3)

    x = jax.random.normal(k_x, (B, C, H, W), dtype=jnp.float32)

    # Deterministic parameter init (module __init__ shapes):
    #   centroids: (K, C) ~ U[0,1);  soft_assign conv weight: (K, C, 1, 1) -> (K, C)
    centroids = jax.random.uniform(k_c, (K, C), dtype=jnp.float32)
    soft_assign_weight = jax.random.normal(k_w, (K, C), dtype=jnp.float32) * 0.1

    vlad = netvlad_forward(x, soft_assign_weight, centroids)
    jax.block_until_ready(vlad)

    assert vlad.shape == (B, K * C), vlad.shape

    # Loose-tolerance check vs the f32 reference (kernel uses bf16 MXU operands
    # and an approximate-reciprocal softmax denominator).
    ref = _netvlad_ref(x, soft_assign_weight, centroids)
    max_err = float(jnp.max(jnp.abs(vlad.astype(jnp.float32) - ref)))
    assert max_err < 3e-2, f"max abs error vs reference: {max_err}"

    print("KERNEL_OK")
</pallas_src>

<mosaic_0001>
module attributes {stable_mosaic.version = 11 : i64} {
  func.func @_netvlad_kernel(%arg0: i32, %arg1: i32, %arg2: memref<1x32x128xf32, #tpu.memory_space<vmem>>, %arg3: memref<8x32xbf16, #tpu.memory_space<vmem>>, %arg4: memref<8x32xf32, #tpu.memory_space<vmem>>, %arg5: memref<1x8x32xf32, #tpu.memory_space<vmem>>, %arg6: memref<8x32xf32, #tpu.memory_space<vmem>>, %arg7: memref<8x1xf32, #tpu.memory_space<vmem>>) attributes {dimension_semantics = [#tpu.dimension_semantics<parallel>, #tpu.dimension_semantics<arbitrary>], iteration_bounds = array<i64: 2, 1>, scalar_prefetch = 0 : i64, scratch_operands = 2 : i64, tpu.core_type = #tpu.core_type<tc>, window_params = [{transform_indices = @transform_0, window_bounds = array<i64: 1, 32, 128>}, {pipeline_mode = #tpu.pipeline_mode<synchronous>, transform_indices = @transform_1, window_bounds = array<i64: 8, 32>}, {pipeline_mode = #tpu.pipeline_mode<synchronous>, transform_indices = @transform_2, window_bounds = array<i64: 8, 32>}, {transform_indices = @transform_3, window_bounds = array<i64: 1, 8, 32>}]} {
    %c0_i32 = arith.constant 0 : i32
    %0 = arith.cmpi eq, %arg1, %c0_i32 : i32
    %1 = arith.extui %0 : i1 to i32
    %c0_i32_0 = arith.constant 0 : i32
    %2 = arith.cmpi ne, %1, %c0_i32_0 : i32
    scf.if %2 {
      %cst_22 = arith.constant 0.000000e+00 : f32
      %49 = vector.broadcast %cst_22 : f32 to vector<8x32xf32>
      %c0_23 = arith.constant 0 : index
      %c0_24 = arith.constant 0 : index
      %50 = vector.load %arg6[%c0_23, %c0_24] : memref<8x32xf32, #tpu.memory_space<vmem>>, vector<8x32xf32>
      tpu.vector_store %arg6[%c0_23, %c0_24], %49 {strides = array<i32>} : memref<8x32xf32, #tpu.memory_space<vmem>>, vector<8x32xf32>,
      %cst_25 = arith.constant 0.000000e+00 : f32
      %51 = vector.broadcast %cst_25 : f32 to vector<8x1xf32>
      %c0_26 = arith.constant 0 : index
      %c0_27 = arith.constant 0 : index
      %52 = vector.load %arg7[%c0_26, %c0_27] : memref<8x1xf32, #tpu.memory_space<vmem>>, vector<8x1xf32>
      tpu.vector_store %arg7[%c0_26, %c0_27], %51 {strides = array<i32>} : memref<8x1xf32, #tpu.memory_space<vmem>>, vector<8x1xf32>,
    } else {
    }
    %c0 = arith.constant 0 : index
    %c0_1 = arith.constant 0 : index
    %c0_2 = arith.constant 0 : index
    %3 = vector.load %arg2[%c0, %c0_1, %c0_2] : memref<1x32x128xf32, #tpu.memory_space<vmem>>, vector<1x32x128xf32>
    %4 = vector.shape_cast %3 : vector<1x32x128xf32> to vector<32x128xf32>
    %5 = arith.mulf %4, %4 : vector<32x128xf32>
    %cst = arith.constant dense<0.000000e+00> : vector<128xf32>
    %6 = vector.multi_reduction <add>, %5, %cst [0] : vector<32x128xf32> to vector<128xf32>
    %7 = vector.shape_cast %6 : vector<128xf32> to vector<1x128xf32>
    %cst_3 = arith.constant 1.000000e-24 : f32
    %8 = vector.broadcast %cst_3 : f32 to vector<1x128xf32>
    %9 = arith.maximumf %7, %8 : vector<1x128xf32>
    %10 = math.rsqrt %9 : vector<1x128xf32>
    %11 = vector.broadcast %10 : vector<1x128xf32> to vector<32x128xf32>
    %12 = arith.mulf %4, %11 : vector<32x128xf32>
    %13 = arith.truncf %12 : vector<32x128xf32> to vector<32x128xbf16>
    %c0_4 = arith.constant 0 : index
    %c0_5 = arith.constant 0 : index
    %14 = vector.load %arg3[%c0_4, %c0_5] : memref<8x32xbf16, #tpu.memory_space<vmem>>, vector<8x32xbf16>
    %cst_6 = arith.constant dense<0.000000e+00> : vector<8x128xf32>
    %15 = tpu.matmul %14, %13, %cst_6 {dimension_numbers = #tpu.dot_dimension_numbers<[1], [0], [0], [1], [0, 0, 1, 1], [], []>} : vector<8x32xbf16>, vector<32x128xbf16>, vector<8x128xf32> -> vector<8x128xf32>
    %cst_7 = arith.constant dense<0xFF800000> : vector<128xf32>
    %16 = vector.multi_reduction <maximumf>, %15, %cst_7 [0] : vector<8x128xf32> to vector<128xf32>
    %17 = vector.shape_cast %16 : vector<128xf32> to vector<1x128xf32>
    %18 = vector.broadcast %17 : vector<1x128xf32> to vector<8x128xf32>
    %19 = arith.subf %15, %18 : vector<8x128xf32>
    %20 = math.exp %19 : vector<8x128xf32>
    %cst_8 = arith.constant dense<0.000000e+00> : vector<128xf32>
    %21 = vector.multi_reduction <add>, %20, %cst_8 [0] : vector<8x128xf32> to vector<128xf32>
    %22 = vector.shape_cast %21 : vector<128xf32> to vector<1x128xf32>
    %23 = tpu.reciprocal %22 {approx = true} : vector<1x128xf32> -> vector<1x128xf32>
    %24 = vector.broadcast %23 : vector<1x128xf32> to vector<8x128xf32>
    %25 = arith.mulf %20, %24 : vector<8x128xf32>
    %26 = tpu.iota {dimensions = array<i32: 1>} : vector<1x128xi32>
    %c128_i32 = arith.constant 128 : i32
    %27 = arith.muli %arg1, %c128_i32 : i32
    %28 = vector.broadcast %27 : i32 to vector<1x128xi32>
    %29 = arith.addi %26, %28 : vector<1x128xi32>
    %c64_i32 = arith.constant 64 : i32
    %30 = vector.broadcast %c64_i32 : i32 to vector<1x128xi32>
    %31 = arith.cmpi slt, %29, %30 : vector<1x128xi32>
    %cst_9 = arith.constant 0.000000e+00 : f32
    %32 = vector.shape_cast %31 : vector<1x128xi1> to vector<1x128xi1>
    %33 = vector.broadcast %32 : vector<1x128xi1> to vector<8x128xi1>
    %34 = vector.broadcast %cst_9 : f32 to vector<8x128xf32>
    %35 = arith.select %33, %25, %34 : vector<8x128xi1>, vector<8x128xf32>
    %c0_10 = arith.constant 0 : index
    %c0_11 = arith.constant 0 : index
    %36 = vector.load %arg6[%c0_10, %c0_11] : memref<8x32xf32, #tpu.memory_space<vmem>>, vector<8x32xf32>
    %37 = arith.truncf %35 : vector<8x128xf32> to vector<8x128xbf16>
    %cst_12 = arith.constant dense<0.000000e+00> : vector<8x32xf32>
    %38 = tpu.matmul %37, %13, %cst_12 {dimension_numbers = #tpu.dot_dimension_numbers<[1], [1], [0], [0], [0, 0, 1, 0], [], []>} : vector<8x128xbf16>, vector<32x128xbf16>, vector<8x32xf32> -> vector<8x32xf32>
    %39 = arith.addf %36, %38 : vector<8x32xf32>
    %c0_13 = arith.constant 0 : index
    %c0_14 = arith.constant 0 : index
    %40 = vector.load %arg6[%c0_13, %c0_14] : memref<8x32xf32, #tpu.memory_space<vmem>>, vector<8x32xf32>
    tpu.vector_store %arg6[%c0_13, %c0_14], %39 {strides = array<i32>} : memref<8x32xf32, #tpu.memory_space<vmem>>, vector<8x32xf32>,
    %c0_15 = arith.constant 0 : index
    %c0_16 = arith.constant 0 : index
    %41 = vector.load %arg7[%c0_15, %c0_16] : memref<8x1xf32, #tpu.memory_space<vmem>>, vector<8x1xf32>
    %cst_17 = arith.constant dense<0.000000e+00> : vector<8xf32>
    %42 = vector.multi_reduction <add>, %35, %cst_17 [1] : vector<8x128xf32> to vector<8xf32>
    %43 = vector.shape_cast %42 : vector<8xf32> to vector<8x1xf32>
    %44 = arith.addf %41, %43 : vector<8x1xf32>
    %c0_18 = arith.constant 0 : index
    %c0_19 = arith.constant 0 : index
    %45 = vector.load %arg7[%c0_18, %c0_19] : memref<8x1xf32, #tpu.memory_space<vmem>>, vector<8x1xf32>
    tpu.vector_store %arg7[%c0_18, %c0_19], %44 {strides = array<i32>} : memref<8x1xf32, #tpu.memory_space<vmem>>, vector<8x1xf32>,
    %c0_i32_20 = arith.constant 0 : i32
    %46 = arith.cmpi eq, %arg1, %c0_i32_20 : i32
    %47 = arith.extui %46 : i1 to i32
    %c0_i32_21 = arith.constant 0 : i32
    %48 = arith.cmpi ne, %47, %c0_i32_21 : i32
    scf.if %48 {
      %c0_22 = arith.constant 0 : index
      %c0_23 = arith.constant 0 : index
      %49 = vector.load %arg6[%c0_22, %c0_23] : memref<8x32xf32, #tpu.memory_space<vmem>>, vector<8x32xf32>
      %c0_24 = arith.constant 0 : index
      %c0_25 = arith.constant 0 : index
      %50 = vector.load %arg7[%c0_24, %c0_25] : memref<8x1xf32, #tpu.memory_space<vmem>>, vector<8x1xf32>
      %c0_26 = arith.constant 0 : index
      %c0_27 = arith.constant 0 : index
      %51 = vector.load %arg4[%c0_26, %c0_27] : memref<8x32xf32, #tpu.memory_space<vmem>>, vector<8x32xf32>
      %52 = vector.broadcast %50 : vector<8x1xf32> to vector<8x32xf32>
      %53 = arith.mulf %52, %51 : vector<8x32xf32>
      %54 = arith.subf %49, %53 : vector<8x32xf32>
      %55 = arith.mulf %54, %54 : vector<8x32xf32>
      %cst_28 = arith.constant dense<0.000000e+00> : vector<8xf32>
      %56 = vector.multi_reduction <add>, %55, %cst_28 [1] : vector<8x32xf32> to vector<8xf32>
      %57 = vector.shape_cast %56 : vector<8xf32> to vector<8x1xf32>
      %cst_29 = arith.constant 1.000000e-24 : f32
      %58 = vector.broadcast %cst_29 : f32 to vector<8x1xf32>
      %59 = arith.maximumf %57, %58 : vector<8x1xf32>
      %60 = math.rsqrt %59 : vector<8x1xf32>
      %61 = vector.broadcast %60 : vector<8x1xf32> to vector<8x32xf32>
      %62 = arith.mulf %54, %61 : vector<8x32xf32>
      %63 = arith.mulf %62, %62 : vector<8x32xf32>
      %64 = vector.shape_cast %63 : vector<8x32xf32> to vector<1x8x32xf32>
      %cst_30 = arith.constant dense<0.000000e+00> : vector<1xf32>
      %65 = vector.multi_reduction <add>, %64, %cst_30 [1, 2] : vector<1x8x32xf32> to vector<1xf32>
      %66 = vector.shape_cast %65 : vector<1xf32> to vector<1x1x1xf32>
      %67 = vector.extract %66[0, 0, 0] : f32 from vector<1x1x1xf32>
      %cst_31 = arith.constant 1.000000e-24 : f32
      %68 = arith.maximumf %67, %cst_31 : f32
      %69 = math.rsqrt %68 : f32
      %70 = vector.broadcast %69 : f32 to vector<8x32xf32>
      %71 = arith.mulf %62, %70 : vector<8x32xf32>
      %c0_32 = arith.constant 0 : index
      %c0_33 = arith.constant 0 : index
      %c0_34 = arith.constant 0 : index
      %72 = vector.load %arg5[%c0_32, %c0_33, %c0_34] : memref<1x8x32xf32, #tpu.memory_space<vmem>>, vector<1x8x32xf32>
      %73 = vector.shape_cast %72 : vector<1x8x32xf32> to vector<8x32xf32>
      %74 = vector.shape_cast %71 : vector<8x32xf32> to vector<1x8x32xf32>
      tpu.vector_store %arg5[%c0_32, %c0_33, %c0_34], %74 {strides = array<i32>} : memref<1x8x32xf32, #tpu.memory_space<vmem>>, vector<1x8x32xf32>,
    } else {
    }
    return
  }
  func.func @transform_0(%arg0: i32, %arg1: i32) -> (i32, i32, i32) {
    %c0_i32 = arith.constant 0 : i32
    %c0_i32_0 = arith.constant 0 : i32
    return %arg0, %c0_i32, %arg1 : i32, i32, i32
  }
  func.func @transform_1(%arg0: i32, %arg1: i32) -> (i32, i32) {
    %c0_i32 = arith.constant 0 : i32
    %c0_i32_0 = arith.constant 0 : i32
    %c0_i32_1 = arith.constant 0 : i32
    return %c0_i32, %c0_i32_0 : i32, i32
  }
  func.func @transform_2(%arg0: i32, %arg1: i32) -> (i32, i32) {
    %c0_i32 = arith.constant 0 : i32
    %c0_i32_0 = arith.constant 0 : i32
    %c0_i32_1 = arith.constant 0 : i32
    return %c0_i32, %c0_i32_0 : i32, i32
  }
  func.func @transform_3(%arg0: i32, %arg1: i32) -> (i32, i32, i32) {
    %c0_i32 = arith.constant 0 : i32
    %c0_i32_0 = arith.constant 0 : i32
    %c0_i32_1 = arith.constant 0 : i32
    return %arg0, %c0_i32, %c0_i32_0 : i32, i32, i32
  }
}

</mosaic_0001>

<bundles_post_ra>
// kernel: tpu_custom_call.1
= control target key start
LH: loop header
LB: loop body
LE: loop exit
PB: predicated region body
PF: predicated region fallthrough
CT: control target
= control target key end

     0   :  { %8 = vsyncpa [#allocation5], 0  ;;  %s1143_s0 = inlined_call_operand.hbm [shape: f32[2,32,128], index: 0, kind: input, shape index: {}]   ;;  %s1144_s1 = inlined_call_operand.hbm [shape: bf16[8,32], index: 1, kind: input, shape index: {}]   ;;  %s1145_s2 = inlined_call_operand.hbm [shape: f32[8,32], index: 2, kind: input, shape index: {}]   ;;  %s1146_s3 = inlined_call_operand.hbm [shape: f32[2,8,32], index: 3, kind: output, shape index: {}]  }
   0x1   :  { %10 = vsyncpa [#allocation5 + $0x1], 0 }
   0x2   :  { %11 = vsyncpa [#allocation8], 0 }
   0x3   :  { %12 = vsyncpa [#allocation6], 0 }
   0x4   :  { %14 = vsyncpa [#allocation6 + $0x1], 0  ;;  %s888_s12 = smov 0   ;;  %s890_s13 = smov 0  }
   0x5   :  { %s892_s14 = smov 0   ;;  %s894_s15 = smov 0  }
   0x6   :  { %s896_s16 = smov 0   ;;  %s898_s17 = smov 0  }
   0x7 LB: > { %s535_s18 = sadd.s32 4294967295, %s856_s17   ;;  %s536_s19 = sadd.s32 4294967294, %s856_s17   ;;  %s856_s17 = sphi %s898_s17, %s20_s17   ;;  %s852_s16 = sphi %s896_s16, %s1172_s16   ;;  %s848_s15 = sphi %s894_s15, %s1171_s15   ;;  %s844_s14 = sphi %s892_s14, %s1170_s14   ;;  %s840_s13 = sphi %s890_s13, %s1169_s13   ;;  %s836_s12 = sphi %s888_s12, %s1168_s12  }
   0x8   : > { %s41_s20 = sadd.s32 1, %s844_s14  ;;  %p48_p0 = scmp.ne.s32.totalorder %s844_s14, %s840_s13 }
   0x9   : > { %p49_p1 = scmp.eq.s32.totalorder %s856_s17, 0  ;;  %p54_p2 = scmp.ne.s32.totalorder %s840_s13, %s836_s12 }
   0xa   : > { %p926_p3 = scmp.eq.s32.totalorder %s535_s18, 0  ;;  %p120_p4 = scmp.eq.s32.totalorder %s535_s18, 1 }
   0xb   : > { %p930_p5 = por %p49_p1, %p48_p0  ;;  %p126_p6 = scmp.eq.s32.totalorder %s536_s19, 1 }
   0xc   : > { %s1153_s21 = scalar_select %p926_p3, 1, 0 }
   0xd   : > { %p936_p7 = por %p926_p3, %p54_p2  ;;  %p940_p8 = por %p120_p4, %p48_p0 }
   0xe   : > { %p944_p9 = por %p126_p6, %p54_p2  ;;  %p537_p10 = scmp.ge.s32.totalorder %s856_s17, 1 }
   0xf   : > { %s1155_s23 = scalar_select %p936_p7, 1, 0 }
  0x10   : > { %s1156_s24 = scalar_select %p940_p8, 1, 0 }
  0x11   : > { %s1157_s25 = scalar_select %p944_p9, 1, 0 }
  0x12   : > { %p133_p11 = scmp.lt.s32.totalorder %s856_s17, 3  ;;  %s858_s27 = smov [#allocation7]  }
  0x13   : > { %s146_s28 = sshll.u32 %s858_s27, 4  ;;  %p613_p1 = scmp.lt.s32.totalorder %s856_s17, 2  ;;  %s147_s28 = int_to_ptr.vmem [resolvable:$true] %s146_s28 }
  0x14   : > { %p951_p13 = pnand %p537_p10, %p133_p11  ;;  %s859_s30 = smov [#allocation9]  }
  0x15   : > { %p960_p4 = pnand %p613_p1, %p930_p5  ;;  %s157_s4 = sshll.u32 %s859_s30, 4  ;;  %s970_s4 = int_to_ptr.vmem [resolvable:$true] %s157_s4 }
  0x16   : > { %s1158_s26 = scalar_select %p951_p13, 1, 0 }
  0x17   : > { %p596_p0 = pneg %p951_p13  ;;  %s684_s8 = scalar_lea.hbm %s1144_s1, 64 }
  0x18   : > { %s1159_s29 = scalar_select %p960_p4, 1, 0 }
  0x19   : > { %p966_p2 = pnand %p596_p0, %p926_p3  ;;  %p685_p5 = scmp.ne.s32.totalorder %s1144_s1, %s684_s8 }
  0x1a   : > { %p691_p1 = scmp.lt.u32.totalorder %s684_s8, %s1144_s1 }
  0x1b   : > { %p686_p6 = pneg %p966_p2 }
  0x1d   : > { %p687_p10 = pnand %p686_p6, %p685_p5 }
  0x1f   : > { %p688_p11 = pneg %p687_p10 }
  0x21   : > { %p693_p0 = pnand %p691_p1, %p688_p11 }
  0x23   : > { %696 = shalt.err (!%p693_p0)
}
  0x24   : > { %s697_s19 = scalar_lea.vmem %s147_s28, 64  ;;  %p705_p3 = scmp.lt.s32.totalorder %s147_s28, %s147_s28 }
  0x25   : > { %p698_p12 = scmp.ne.s32.totalorder %s147_s28, %s697_s19  ;;  %p706_p7 = scmp.lt.s32.totalorder %s697_s19, %s697_s19 }
  0x27   : > { %p700_p9 = pnand %p698_p12, %p686_p6  ;;  %p707_p13 = por %p706_p7, %p705_p3 }
  0x29   : > { %p701_p8 = pneg %p700_p9 }
  0x2b   : > { %p708_p4 = pnand %p707_p13, %p701_p8 }
  0x2d   : > { %711 = shalt.err (!%p708_p4)
}
  0x2e   : > { %599 = dma.hbm_to_vmem [thread:$0]  (!%p966_p2), %s1144_s1, 64, %s147_s28, [#allocation8]  }
  0x2f   : > { %s712_s7 = scalar_lea.hbm %s1145_s2, 128 }
  0x30   : > { %p713_p9 = scmp.ne.s32.totalorder %s1145_s2, %s712_s7  ;;  %p719_p8 = scmp.lt.u32.totalorder %s712_s7, %s1145_s2 }
  0x32   : > { %p715_p3 = pnand %p713_p9, %p686_p6 }
  0x34   : > { %p716_p7 = pneg %p715_p3 }
  0x36   : > { %p721_p12 = pnand %p719_p8, %p716_p7 }
  0x38   : > { %724 = shalt.err (!%p721_p12)
}
  0x39   : > { %s725_s28 = scalar_lea.vmem %s970_s4, 128  ;;  %p733_p10 = scmp.lt.s32.totalorder %s970_s4, %s970_s4 }
  0x3a   : > { %p726_p13 = scmp.ne.s32.totalorder %s970_s4, %s725_s28  ;;  %p734_p11 = scmp.lt.s32.totalorder %s725_s28, %s725_s28 }
  0x3c   : > { %p728_p4 = pnand %p726_p13, %p686_p6  ;;  %p735_p1 = por %p734_p11, %p733_p10 }
  0x3e   : > { %p729_p5 = pneg %p728_p4 }
  0x40   : > { %p736_p0 = pnand %p735_p1, %p729_p5 }
  0x42   : > { %739 = shalt.err (!%p736_p0)
}
  0x43   : > { %602 = dma.hbm_to_vmem [thread:$0]  (!%p966_p2), %s1145_s2, 128, %s970_s4, [#allocation8]  }
  0x44   : > { %s32_s22 = sadd.s32 1, %s852_s16  ;;  %s168_s27 = sand.u32 1, %s844_s14  }
  0x45   : > { %p34_p6 = scmp.ge.s32.totalorder %s32_s22, 2  ;;  %s541_s30 = sshll.u32 %s168_s27, 5 }
  0x46   : > { %s557_s6 = sshll.u32 %s852_s16, 9  ;;  %s172_s4 = scalar_lea.vmem [#allocation4], %s541_s30 }
  0x47   : > { %s1174_s22 = smov (%p34_p6, %s32_s22), 0  ;;  %s1027_s8 = scalar_lea.hbm %s1143_s0, %s557_s6 }
  0x48   : > { %s36_s9 = ssub.s32 %s852_s16, %s1174_s22  ;;  %s180_s10 = sshll.u32 %s172_s4, 4  ;;  %s1031_s10 = int_to_ptr.vmem [resolvable:$true] %s180_s10 }
  0x49   : > { %p39_p2 = scmp.eq.s32.totalorder %s36_s9, 0  ;;  %s1038_s28 = scalar_lea.sflag [#allocation5], %s168_s27 }
  0x4a   : > { %s740_s18 = scalar_lea.hbm %s1027_s8, 512  ;;  %p1161_p3 = scmp.ne.s32.totalorder %s1159_s29, 0 }
  0x4b   : > { %s1036_s11 = scalar_select %p39_p2, %s844_s14, %s41_s20  }
  0x4c   : > { %p741_p9 = scmp.ne.s32.totalorder %s1027_s8, %s740_s18  ;;  %p742_p7 = pneg %p1161_p3 }
  0x4d   : > { %s745_s30 = scalar_lea.hbm %s1143_s0, 1024  ;;  %p746_p13 = scmp.lt.u32.totalorder %s1027_s8, %s1143_s0 }
  0x4e   : > { %p743_p8 = pnand %p742_p7, %p741_p9  ;;  %p747_p4 = scmp.lt.u32.totalorder %s745_s30, %s740_s18 }
  0x4f   : > { %p749_p10 = scmp.lt.u32.totalorder %s740_s18, %s1027_s8 }
  0x50   : > { %p744_p12 = pneg %p743_p8  ;;  %p748_p5 = por %p747_p4, %p746_p13 }
  0x52   : > { %p750_p11 = por %p749_p10, %p748_p5 }
  0x54   : > { %p751_p1 = pnand %p750_p11, %p744_p12 }
  0x56   : > { %754 = shalt.err (!%p751_p1)
}
  0x57   : > { %s755_s20 = scalar_lea.vmem %s1031_s10, 512  ;;  %s860_s27 = smov [#allocation4]  }
  0x58   : > { %p756_p0 = scmp.ne.s32.totalorder %s1031_s10, %s755_s20  ;;  %s760_s9 = sshll.u32 %s860_s27, 4  ;;  %s761_s9 = int_to_ptr.vmem [resolvable:$false] %s760_s9 }
  0x59   : > { %s762_s4 = scalar_lea.vmem %s761_s9, 1024  ;;  %p763_p9 = scmp.lt.s32.totalorder %s1031_s10, %s761_s9 }
  0x5a   : > { %p758_p6 = pnand %p756_p0, %p742_p7  ;;  %p764_p8 = scmp.lt.s32.totalorder %s762_s4, %s755_s20 }
  0x5c   : > { %p759_p2 = pneg %p758_p6  ;;  %p765_p13 = por %p764_p8, %p763_p9 }
  0x5e   : > { %p766_p4 = pnand %p765_p13, %p759_p2 }
  0x60   : > { %769 = shalt.err (!%p766_p4)
}
  0x61   : > { %s861_s18 = smov 128   ;;  %s862_s19 = smov 8  }
  0x62   : > { %606 = dma.hbm_to_vmem [thread:$0]  (!%p1161_p3), %s1027_s8, 512, %s1031_s10, %s1038_s28, %s861_s18, %s861_s18, %s862_s19  }
  0x63   : > { %p1162_p7 = scmp.ne.s32.totalorder %s1158_s26, 0 }
  0x64   : > { %s1069_s6 = sand.u32 (!%p1162_p7), 1, %s840_s13   ;;  %p1163_p12 = scmp.ne.s32.totalorder (!%p1162_p7), %s1155_s23, 0 }
  0x65   : > { %192 = sbr.rel (%p1162_p7) target bundleno = 1154 (0x482), region = 32  ;;  %s545_s30 = sshll.u32 (!%p1162_p7), %s1069_s6, 5 }
  0x66   : > { %s195_s5 = scalar_lea.sflag (!%p1162_p7), [#allocation5], %s1069_s6  ;;  %s198_s7 = scalar_lea.vmem (!%p1162_p7), [#allocation4], %s545_s30 }
  0x6c   : > { %823 = dma.done.wait (%p1163_p12), %s195_s5, 512  }
  0x6d   : > { %825 = vsyncadd (%p1163_p12), %s195_s5, 4294966784  ;;  %p1164_p5 = scmp.ne.s32.totalorder %s1153_s21, 0 }
  0x6f   : > { %827 = dma.done.wait (%p1164_p5), [#allocation8], 192  }
  0x70   : > { %829 = vsyncadd (%p1164_p5), [#allocation8], 4294967104  ;;  %vm234_vm0 = vcmask 261120   ;;  %v863_v0 = vmov 0.0   ;;  %vm864_vm1 = vmmov 0   ;;  %v238_v1 = vld [vmem:[%s198_s7] sm:$0xff]  ;;  %v325_v46 = vlaneseq }
  0x71   : > { %564 = vmatprep.subr.bf16.mxu0 %v863_v0  ;;  %568 = vmatprep.mubr.msk.bf16.mxu0 %vm864_vm1, %v863_v0  ;;  %235 = vst.msk [vmem:[#allocation2] sm:$0xff] %vm234_vm0, %v863_v0  ;;  %v239_v2 = vld [vmem:[%s198_s7 + $0x8] sm:$0xff]  ;;  %v240_v3 = vld [vmem:[%s198_s7 + $0x10] sm:$0xff]  ;;  %v241_v4 = vld [vmem:[%s198_s7 + $0x18] sm:$0xff]  ;;  %v242_v5 = vmul.f32 %v238_v1, %v238_v1  ;;  %vm236_vm2 = vcmask 7168   ;;  %v865_v52 = vmov 0  }
  0x72   : > { %572 = vmatprep.subr.bf16.mxu1 %v863_v0  ;;  %576 = vmatprep.mubr.msk.bf16.mxu1 %vm864_vm1, %v863_v0  ;;  %v243_v6 = vmul.f32 %v239_v2, %v239_v2  ;;  %v244_v7 = vmul.f32 %v240_v3, %v240_v3  ;;  %v245_v8 = vmul.f32 %v241_v4, %v241_v4  ;;  %v263_v26 = vld [vmem:[#allocation7] sm:$0xf]  ;;  %v326_v47 = vand.u32 127, %v325_v46  ;;  %v389_v63 = vld [vmem:[#allocation9] sm:$0xff]  ;;  %s866_s23 = smov 1e-24  }
  0x73   : > { %237 = vst.msk [vmem:[#allocation3] sm:$0xff] %vm236_vm2, %v863_v0  ;;  %673 = vset.pattern.permute.xlu0 %v865_v52  ;;  %s548_s29 = sshll.u32 %s1069_s6, 3  ;;  %s554_s8 = sshll.u32 %s848_s15, 7 }
  0x74   : > { %v246_v9 = vadd.f32 %v243_v6, %v242_v5  ;;  %vm330_vm3 = vcmp.lt.s32.totalorder %v326_v47, 64  ;;  %s228_s10 = scalar_lea.vmem [#allocation10], %s548_s29  ;;  %s1093_s4 = scalar_lea.hbm %s1146_s3, %s554_s8 }
  0x75   : > { %vm550_vm4 = vmpackc.low %vm330_vm3, %vm330_vm3  ;;  %s436_s28 = sshll.u32 %s228_s10, 4  ;;  %s423_s18 = scalar_lea.sflag [#allocation6], %s1069_s6  ;;  %s1095_s28 = int_to_ptr.vmem [resolvable:$true] %s436_s28 }
  0x76   : > { %v247_v10 = vadd.f32 %v246_v9, %v244_v7  ;;  %s770_s19 = scalar_lea.vmem %s1095_s28, 128  ;;  %p1165_p10 = scmp.ne.s32.totalorder %s1156_s24, 0 }
  0x77   : > { %p771_p3 = scmp.ne.s32.totalorder %s1095_s28, %s770_s19  ;;  %s867_s15 = smov [#allocation10]  }
  0x78   : > { %v248_v11 = vadd.f32 %v247_v10, %v245_v8  ;;  %v334_v57 = vld [vmem:[#allocation2] sm:$0xff]  ;;  %s774_s30 = sshll.u32 %s867_s15, 4  ;;  %s775_s30 = int_to_ptr.vmem [resolvable:$false] %s774_s30 }
  0x79   : > { %p772_p11 = pnand %p771_p3, %p1165_p10  ;;  %s776_s5 = scalar_lea.vmem %s775_s30, 256 }
  0x7a   : > { %v249_v12 = vrot.slane %v248_v11, 4  ;;  %v378_v53 = vld [vmem:[#allocation3] sm:$0xff]  ;;  %p777_p0 = scmp.lt.s32.totalorder %s1095_s28, %s775_s30  ;;  %p778_p6 = scmp.lt.s32.totalorder %s776_s5, %s770_s19 }
  0x7b   : > { %p773_p1 = pneg %p772_p11 }
  0x7c   : > { %v250_v13 = vadd.f32 %v249_v12, %v248_v11  ;;  %p779_p2 = por %p778_p6, %p777_p0 }
  0x7e   : > { %v251_v14 = vrot.slane %v250_v13, 2  ;;  %p780_p9 = pnand %p779_p2, %p773_p1 }
  0x80   : > { %v252_v15 = vadd.f32 %v251_v14, %v250_v13 }
  0x82   : > { %v253_v16 = vrot.slane %v252_v15, 1 }
  0x84   : > { %v254_v17 = vadd.f32 %v253_v16, %v252_v15 }
  0x86   : > { %v255_v18 = vmax.f32 %v254_v17, 1e-24 }
  0x88   : > { %674 = vrsqrt.f32 %v255_v18 }
  0x92   : > { %v675_v19 = vpop.eup %674 }
  0x93   : > { %v257_v20 = vmul.f32 %v675_v19, %v238_v1  ;;  %v258_v21 = vmul.f32 %v675_v19, %v239_v2  ;;  %v259_v22 = vmul.f32 %v675_v19, %v240_v3  ;;  %v260_v23 = vmul.f32 %v675_v19, %v241_v4 }
  0x95   : > { %v261_v24 = vpack.c.bf16 %v258_v21, %v257_v20  ;;  %v262_v25 = vpack.c.bf16 %v260_v23, %v259_v22 }
  0x97   : > { %565 = vmatpush3.bf16.msra.mxu0 %v261_v24  ;;  %573 = vmatpush3.bf16.xpose.msra.mxu1 %v261_v24 }
  0x98   : > { %566 = vmatprep.subr.bf16.mxu0 %v863_v0  ;;  %574 = vmatprep.subr.bf16.mxu1 %v863_v0 }
  0x9b   : > { %567 = vmatpush3.bf16.msra.mxu0 %v262_v25 }
  0x9e   : > { %569 = vmatmul.mubr.msk.bf16.vlgmr.msra.gmra.mrb[0].mxu0 %vm234_vm0, %v263_v26 }
  0x9f   : > { %575 = vmatpush3.bf16.xpose.msra.mxu1 %v262_v25 }
 0x171   : > { %v302_v27 = vpop.f32.mrb[0].mxu0 }
 0x172   : > { %v308_v28 = vrot.slane %v302_v27, 4  ;;  %v570_v29 = vpop.f32.mrb[1].mxu0 }
 0x173   : > { %v305_v30 = vpop.f32.mrb[2].mxu0 }
 0x174   : > { %v309_v31 = vmax.f32 %v302_v27, %v308_v28  ;;  %v571_v32 = vpop.f32.mrb[3].mxu0 }
 0x176   : > { %v310_v33 = vrot.slane %v309_v31, 2 }
 0x178   : > { %v311_v34 = vmax.f32 %v309_v31, %v310_v33 }
 0x17a   : > { %v312_v35 = vrot.slane %v311_v34, 1 }
 0x17c   : > { %v313_v36 = vmax.f32 %v311_v34, %v312_v35 }
 0x17e   : > { %v314_v37 = vsub.f32 %v302_v27, %v313_v36 }
 0x180   : > { %v315_v38 = vmul.f32 1.442695, %v314_v37 }
 0x182   : > { %676 = vpow2.f32 %v315_v38 }
 0x18c   : > { %v677_v39 = vpop.eup %676 }
 0x18d   : > { %v317_v40 = vrot.slane %v677_v39, 4 }
 0x18f   : > { %v318_v41 = vadd.f32 %v677_v39, %v317_v40 }
 0x191   : > { %v319_v42 = vrot.slane %v318_v41, 2 }
 0x193   : > { %v320_v43 = vadd.f32 %v319_v42, %v318_v41 }
 0x195   : > { %v321_v44 = vrot.slane %v320_v43, 1 }
 0x197   : > { %v322_v45 = vadd.f32 %v321_v44, %v320_v43 }
 0x199   : > { %678 = vrcp.f32 %v322_v45 }
 0x1a3   : > { %v679_v48 = vpop.eup %678 }
 0x1a4   : > { %v324_v49 = vmul.f32 %v679_v48, %v677_v39 }
 0x1a6   : > { %v333_v50 = vsel %vm330_vm3, %v324_v49, 0.0  ;;  %v551_v51 = vpack.c.bf16 %v324_v49, %v324_v49 }
 0x1a7   : > { %379 = vadd.xlane.f32.xlu0 %v333_v50 }
 0x1a8   : > { %577 = vmatmul.mubr.msk.bf16.vlgmr.msra.gmra.mrb[0].mxu1 %vm550_vm4, %v551_v51 }
 0x234   : > { %v380_v54 = vpop.xlane.xlu0 %379 }
 0x235   : > { %v381_v55 = vadd.f32 %v380_v54, %v378_v53 }
 0x237   : > { %383 = vst.msk [vmem:[#allocation3] sm:$0xff] %vm236_vm2, %v381_v55 }
 0x23e   : > { %v388_v56 = vld [vmem:[#allocation3] sm:$0xff] }
 0x23f   : > { %392 = vperm.xlu0 %673, %v388_v56  }
 0x27b   : > { %v370_v58 = vpop.f32.mrb[0].mxu1 }
 0x27c   : > { %v376_v59 = vadd.f32 %v370_v58, %v334_v57  ;;  %v578_v60 = vpop.f32.mrb[1].mxu1 }
 0x27d   : > { %v373_v61 = vpop.f32.mrb[2].mxu1 }
 0x27e   : > { %377 = vst.msk [vmem:[#allocation2] sm:$0xff] %vm234_vm0, %v376_v59  ;;  %v579_v62 = vpop.f32.mrb[3].mxu1 }
 0x285   : > { %v387_v2 = vld [vmem:[#allocation2] sm:$0xff] }
 0x2be   : > { %v393_v0 = vpop.permute.xlu0 %392 }
 0x2bf   : > { %v395_v1 = vmul.f32 %v393_v0, %v389_v63 }
 0x2c1   : > { %v396_v3 = vsub.f32 %v387_v2, %v395_v1 }
 0x2c3   : > { %v397_v4 = vmul.f32 %v396_v3, %v396_v3 }
 0x2c5   : > { %v398_v5 = vsel %vm234_vm0, %v397_v4, 0.0 }
 0x2c6   : > { %399 = vadd.xlane.f32.xlu1 %v398_v5 }
 0x353   : > { %v400_v6 = vpop.xlane.xlu1 %399 }
 0x354   : > { %v401_v7 = vmax.f32 %v400_v6, 1e-24 }
 0x356   : > { %680 = vrsqrt.f32 %v401_v7 }
 0x360   : > { %v681_v8 = vpop.eup %680 }
 0x361   : > { %v403_v9 = vmul.f32 %v681_v8, %v396_v3 }
 0x363   : > { %v404_v10 = vmul.f32 %v403_v9, %v403_v9 }
 0x365   : > { %v405_v11 = vsel %vm234_vm0, %v404_v10, 0.0 }
 0x366   : > { %406 = vadd.xlane.f32.xlu1 %v405_v11 }
 0x3f3   : > { %v407_v12 = vpop.xlane.xlu1 %406 }
 0x3f4   : > { %v408_v13 = vrot.slane %v407_v12, 4 }
 0x3f6   : > { %v409_v14 = vadd.f32 %v408_v13, %v407_v12 }
 0x3f8   : > { %v410_v15 = vrot.slane %v409_v14, 2 }
 0x3fa   : > { %v411_v16 = vadd.f32 %v410_v15, %v409_v14 }
 0x3fc   : > { %v412_v17 = vrot.slane %v411_v16, 1 }
 0x3fe   : > { %v413_v18 = vadd.f32 %v412_v17, %v411_v16 }
 0x400   : > { %580 = vpush %v413_v18 }
 0x431   : > { %s581_s21 = spop %580 }
 0x432   : > { %s415_s26 = smax.f32 %s866_s23, %s581_s21 }
 0x433   : > { %v416_v19 = vstv %s415_s26 }
 0x434   : > { %682 = vrsqrt.f32 %v416_v19 }
 0x43e   : > { %v683_v20 = vpop.eup %682 }
 0x43f   : > { %582 = vpush %v683_v20 }
 0x470   : > { %s583_s20 = spop %582 }
 0x471   : > { %v419_v21 = vstv %s583_s20 }
 0x472   : > { %v420_v22 = vmul.f32 %v419_v21, %v403_v9 }
 0x474   : > { %421 = vst.msk [vmem:[%s228_s10] sm:$0xff] %vm234_vm0, %v420_v22 }
 0x475   : > { %783 = shalt.err (!%p780_p9)
}
 0x476   : > { %s784_s6 = scalar_lea.hbm %s1093_s4, 128  ;;  %s788_s23 = scalar_lea.hbm %s1146_s3, 256 }
 0x477   : > { %p785_p8 = scmp.ne.s32.totalorder %s1093_s4, %s784_s6  ;;  %p789_p7 = scmp.lt.u32.totalorder %s1093_s4, %s1146_s3 }
 0x478   : > { %p790_p12 = scmp.lt.u32.totalorder %s788_s23, %s784_s6  ;;  %p792_p3 = scmp.lt.u32.totalorder %s784_s6, %s1093_s4 }
 0x479   : > { %p786_p13 = pnand %p785_p8, %p1165_p10 }
 0x47a   : > { %p791_p5 = por %p790_p12, %p789_p7 }
 0x47b   : > { %p787_p4 = pneg %p786_p13 }
 0x47c   : > { %p793_p11 = por %p792_p3, %p791_p5 }
 0x47e   : > { %p794_p1 = pnand %p793_p11, %p787_p4 }
 0x480   : > { %797 = shalt.err (!%p794_p1)
}
 0x481   : > { %594 = dma.vmem_to_hbm [thread:$0]  (%p1165_p10), %s1095_s28, 128, %s1093_s4, %s423_s18  }
 0x482 PF: > { %s448_s8 = sand.u32 1, %s836_s12   ;;  %p1166_p0 = scmp.ne.s32.totalorder %s1157_s25, 0 }
 0x483   : > { %p1167_p6 = scmp.ge.s32.totalorder %s856_s17, 2  ;;  %s449_s10 = scalar_lea.sflag [#allocation6], %s448_s8 }
 0x485   : > { %p608_p2 = pnand %p1167_p6, %p1166_p0 }
 0x487   : > { %831 = dma.done.wait (!%p608_p2), %s449_s10, 128  }
 0x488   : > { %833 = vsyncadd (!%p608_p2), %s449_s10, 4294967168  ;;  %s20_s17 = sadd.s32 1, %s856_s17   ;;  %s1168_s12 = smov %s840_s13 }
 0x489   : > { %p17_p9 = scmp.ge.s32.totalorder %s20_s17, 4   ;;  %s1169_s13 = smov %s844_s14 }
 0x48a   : > { %s1170_s14 = smov %s1036_s11  ;;  %s1171_s15 = smov %s852_s16 }
 0x48b   : > { %s1172_s16 = smov %s1174_s22  ;;  %19 = sbr.rel (!%p17_p9) target bundleno = 7 (0x7), region = 93 }
 0x492   :  { %454 = vsyncpa [#allocation5], 1 }
 0x493   :  { %456 = vsyncpa [#allocation5 + $0x1], 1 }
 0x494   :  { %457 = vsyncpa [#allocation8], 1 }
 0x495   :  { %458 = vsyncpa [#allocation6], 1 }
 0x496   :  { %460 = vsyncpa [#allocation6 + $0x1], 1 }

</bundles_post_ra>
